<compile_context>
chip_gen: v5e
topology: v5e:2x2
jax: 0.10.0
libtpu: 0.0.40
codegen_flags: <defaults>
</compile_context>

<pallas_src>
import functools

import jax
import jax.numpy as jnp
from jax import lax
from jax.experimental import pallas as pl
from jax.experimental.pallas import tpu as pltpu

LANE = 128
ACC_ROWS = 64            # widened VMEM accumulator: (64, 128) f32
MAX_TM = 8192            # 8192 * 128 * 4B = 4 MiB per f32 input block
VMEM_LIMIT = 32 * 1024 * 1024


def _round_up(x, m):
    return ((x + m - 1) // m) * m


def _cdiv(a, b):
    return (a + b - 1) // b


def _mfpe_kernel(x_ref, t_ref, o_ref, acc_ref, *, tm, steps, rows, needs_mask):
    i = pl.program_id(0)  # reduction step

    # Zero the VMEM accumulator on the first step.
    @pl.when(i == 0)
    def _():
        acc_ref[...] = jnp.zeros_like(acc_ref)

    # Cast to f32 BEFORE the subtraction (precision for low-precision inputs).
    x = x_ref[...].astype(jnp.float32)
    t = t_ref[...].astype(jnp.float32)
    d = x - t
    d2 = d * d
    d4 = d2 * d2

    def _accumulate(v):
        # Partial-reduce (tm, 128) onto the (64, 128) accumulator: many short,
        # independent VPU add chains; no XLU / scalar round-trip here.
        acc_ref[...] += v.reshape(tm // ACC_ROWS, ACC_ROWS, LANE).sum(axis=0)

    if needs_mask:
        # Only the last block can contain rows past the real row count — keep
        # the iota/compare/select off the steady-state path.
        @pl.when(i < steps - 1)
        def _():
            _accumulate(d4)

        @pl.when(i == steps - 1)
        def _():
            row = i * tm + lax.broadcasted_iota(jnp.int32, (tm, LANE), 0)
            _accumulate(jnp.where(row < rows, d4, jnp.float32(0.0)))
    else:
        _accumulate(d4)

    # Final full reduce -> scalar partial sum in SMEM.
    @pl.when(i == steps - 1)
    def _():
        o_ref[0, 0] = jnp.sum(acc_ref[...])


def _mfpe_main_sum(x2, t2, rows, tm, steps, needs_mask):
    kernel = functools.partial(
        _mfpe_kernel, tm=tm, steps=steps, rows=rows, needs_mask=needs_mask)

    out = pl.pallas_call(
        kernel,
        out_shape=jax.ShapeDtypeStruct((1, 1), jnp.float32),
        grid_spec=pltpu.PrefetchScalarGridSpec(
            num_scalar_prefetch=0,
            grid=(steps,),
            in_specs=[
                pl.BlockSpec((tm, LANE), lambda i: (i, 0)),
                pl.BlockSpec((tm, LANE), lambda i: (i, 0)),
            ],
            out_specs=pl.BlockSpec((1, 1), lambda i: (0, 0),
                                   memory_space=pltpu.SMEM),
            scratch_shapes=[pltpu.VMEM((ACC_ROWS, LANE), jnp.float32)],
        ),
        compiler_params=pltpu.CompilerParams(
            dimension_semantics=("arbitrary",),
            vmem_limit_bytes=VMEM_LIMIT,
        ),
    )(x2, t2)
    return out[0, 0]


def mean_fourth_power_error(inputs, targets):
    assert inputs.shape == targets.shape, "inputs/targets must match shapes"
    n = inputs.size

    x = inputs.reshape(-1)
    t = targets.reshape(-1)

    n_tail = n % LANE
    n_main = n - n_tail

    total = jnp.float32(0.0)

    if n_main:
        rows = n_main // LANE
        x2 = x[:n_main].reshape(rows, LANE)   # no-op slice when n_tail == 0
        t2 = t[:n_main].reshape(rows, LANE)

        tm = min(MAX_TM, _round_up(rows, ACC_ROWS))
        steps = _cdiv(rows, tm)
        needs_mask = steps * tm != rows

        total = total + _mfpe_main_sum(x2, t2, rows, tm, steps, needs_mask)

    if n_tail:
        # <=127-element tail: a few hundred bytes of plain-JAX work instead of
        # a full-array pad copy of both operands.
        dx = x[n_main:].astype(jnp.float32) - t[n_main:].astype(jnp.float32)
        dx2 = dx * dx
        total = total + jnp.sum(dx2 * dx2)

    return total / n


if __name__ == "__main__":
    key = jax.random.PRNGKey(0)
    k1, k2, k3, k4 = jax.random.split(key, 4)

    # Small NCHW-like shapes (batch=2, channels=4, spatial=16x16).
    shape = (2, 4, 16, 16)
    inputs = jax.random.normal(k1, shape, dtype=jnp.float32)
    targets = jax.random.normal(k2, shape, dtype=jnp.float32)

    loss = mean_fourth_power_error(inputs, targets)
    loss = jax.block_until_ready(loss)

    ref = jnp.mean((inputs - targets) ** 4)
    assert jnp.allclose(loss, ref, rtol=1e-5, atol=1e-6), (loss, ref)

    # Lane-misaligned sanity check (exercises kernel + plain-JAX tail path).
    shape2 = (2, 4, 17, 17)  # 2312 elements, not a multiple of 128
    inputs2 = jax.random.normal(k3, shape2, dtype=jnp.float32)
    targets2 = jax.random.normal(k4, shape2, dtype=jnp.float32)
    loss2 = jax.block_until_ready(mean_fourth_power_error(inputs2, targets2))
    ref2 = jnp.mean((inputs2 - targets2) ** 4)
    assert jnp.allclose(loss2, ref2, rtol=1e-5, atol=1e-6), (loss2, ref2)

    print("KERNEL_OK")
</pallas_src>

<mosaic_0001>
module attributes {stable_mosaic.version = 11 : i64} {
  func.func @_mfpe_kernel(%arg0: i32, %arg1: memref<64x128xf32, #tpu.memory_space<vmem>>, %arg2: memref<64x128xf32, #tpu.memory_space<vmem>>, %arg3: memref<1x1xf32, #tpu.memory_space<smem>>, %arg4: memref<64x128xf32, #tpu.memory_space<vmem>>) attributes {dimension_semantics = [#tpu.dimension_semantics<arbitrary>], iteration_bounds = array<i64: 1>, scalar_prefetch = 0 : i64, scratch_operands = 1 : i64, tpu.core_type = #tpu.core_type<tc>, window_params = [{transform_indices = @transform_0, window_bounds = array<i64: 64, 128>}, {transform_indices = @transform_1, window_bounds = array<i64: 64, 128>}, {transform_indices = @transform_2, window_bounds = array<i64: 1, 1>}]} {
    %c0_i32 = arith.constant 0 : i32
    %0 = arith.cmpi eq, %arg0, %c0_i32 : i32
    %1 = arith.extui %0 : i1 to i32
    %c0_i32_0 = arith.constant 0 : i32
    %2 = arith.cmpi ne, %1, %c0_i32_0 : i32
    scf.if %2 {
      %cst = arith.constant 0.000000e+00 : f32
      %17 = vector.broadcast %cst : f32 to vector<64x128xf32>
      %c0_10 = arith.constant 0 : index
      %c0_11 = arith.constant 0 : index
      %18 = vector.load %arg4[%c0_10, %c0_11] : memref<64x128xf32, #tpu.memory_space<vmem>>, vector<64x128xf32>
      tpu.vector_store %arg4[%c0_10, %c0_11], %17 {strides = array<i32>} : memref<64x128xf32, #tpu.memory_space<vmem>>, vector<64x128xf32>,
    } else {
    }
    %c0 = arith.constant 0 : index
    %c0_1 = arith.constant 0 : index
    %3 = vector.load %arg1[%c0, %c0_1] : memref<64x128xf32, #tpu.memory_space<vmem>>, vector<64x128xf32>
    %c0_2 = arith.constant 0 : index
    %c0_3 = arith.constant 0 : index
    %4 = vector.load %arg2[%c0_2, %c0_3] : memref<64x128xf32, #tpu.memory_space<vmem>>, vector<64x128xf32>
    %5 = arith.subf %3, %4 : vector<64x128xf32>
    %6 = arith.mulf %5, %5 : vector<64x128xf32>
    %7 = arith.mulf %6, %6 : vector<64x128xf32>
    %c0_i32_4 = arith.constant 0 : i32
    %8 = arith.cmpi slt, %arg0, %c0_i32_4 : i32
    %9 = arith.extui %8 : i1 to i32
    %c0_i32_5 = arith.constant 0 : i32
    %10 = arith.cmpi ne, %9, %c0_i32_5 : i32
    scf.if %10 {
      %c0_10 = arith.constant 0 : index
      %c0_11 = arith.constant 0 : index
      %17 = vector.load %arg4[%c0_10, %c0_11] : memref<64x128xf32, #tpu.memory_space<vmem>>, vector<64x128xf32>
      %18 = vector.shape_cast %7 : vector<64x128xf32> to vector<1x64x128xf32>
      %cst = arith.constant dense<0.000000e+00> : vector<64x128xf32>
      %19 = vector.multi_reduction <add>, %18, %cst [0] : vector<1x64x128xf32> to vector<64x128xf32>
      %20 = arith.addf %17, %19 : vector<64x128xf32>
      %c0_12 = arith.constant 0 : index
      %c0_13 = arith.constant 0 : index
      %21 = vector.load %arg4[%c0_12, %c0_13] : memref<64x128xf32, #tpu.memory_space<vmem>>, vector<64x128xf32>
      tpu.vector_store %arg4[%c0_12, %c0_13], %20 {strides = array<i32>} : memref<64x128xf32, #tpu.memory_space<vmem>>, vector<64x128xf32>,
    } else {
    }
    %c0_i32_6 = arith.constant 0 : i32
    %11 = arith.cmpi eq, %arg0, %c0_i32_6 : i32
    %12 = arith.extui %11 : i1 to i32
    %c0_i32_7 = arith.constant 0 : i32
    %13 = arith.cmpi ne, %12, %c0_i32_7 : i32
    scf.if %13 {
      %c64_i32 = arith.constant 64 : i32
      %17 = arith.muli %arg0, %c64_i32 : i32
      %18 = tpu.iota {dimensions = array<i32: 0>} : vector<64x128xi32>
      %19 = vector.broadcast %17 : i32 to vector<64x128xi32>
      %20 = arith.addi %19, %18 : vector<64x128xi32>
      %c16_i32 = arith.constant 16 : i32
      %21 = vector.broadcast %c16_i32 : i32 to vector<64x128xi32>
      %22 = arith.cmpi slt, %20, %21 : vector<64x128xi32>
      %cst = arith.constant 0.000000e+00 : f32
      %23 = vector.broadcast %cst : f32 to vector<64x128xf32>
      %24 = arith.select %22, %7, %23 : vector<64x128xi1>, vector<64x128xf32>
      %c0_10 = arith.constant 0 : index
      %c0_11 = arith.constant 0 : index
      %25 = vector.load %arg4[%c0_10, %c0_11] : memref<64x128xf32, #tpu.memory_space<vmem>>, vector<64x128xf32>
      %26 = vector.shape_cast %24 : vector<64x128xf32> to vector<1x64x128xf32>
      %cst_12 = arith.constant dense<0.000000e+00> : vector<64x128xf32>
      %27 = vector.multi_reduction <add>, %26, %cst_12 [0] : vector<1x64x128xf32> to vector<64x128xf32>
      %28 = arith.addf %25, %27 : vector<64x128xf32>
      %c0_13 = arith.constant 0 : index
      %c0_14 = arith.constant 0 : index
      %29 = vector.load %arg4[%c0_13, %c0_14] : memref<64x128xf32, #tpu.memory_space<vmem>>, vector<64x128xf32>
      tpu.vector_store %arg4[%c0_13, %c0_14], %28 {strides = array<i32>} : memref<64x128xf32, #tpu.memory_space<vmem>>, vector<64x128xf32>,
    } else {
    }
    %c0_i32_8 = arith.constant 0 : i32
    %14 = arith.cmpi eq, %arg0, %c0_i32_8 : i32
    %15 = arith.extui %14 : i1 to i32
    %c0_i32_9 = arith.constant 0 : i32
    %16 = arith.cmpi ne, %15, %c0_i32_9 : i32
    scf.if %16 {
      %c0_10 = arith.constant 0 : index
      %c0_11 = arith.constant 0 : index
      %17 = vector.load %arg4[%c0_10, %c0_11] : memref<64x128xf32, #tpu.memory_space<vmem>>, vector<64x128xf32>
      %18 = vector.shape_cast %17 : vector<64x128xf32> to vector<1x64x128xf32>
      %cst = arith.constant dense<0.000000e+00> : vector<1xf32>
      %19 = vector.multi_reduction <add>, %18, %cst [1, 2] : vector<1x64x128xf32> to vector<1xf32>
      %20 = vector.shape_cast %19 : vector<1xf32> to vector<1x1x1xf32>
      %21 = vector.extract %20[0, 0, 0] : f32 from vector<1x1x1xf32>
      %c0_12 = arith.constant 0 : index
      %c0_13 = arith.constant 0 : index
      %22 = memref.load %arg3[%c0_12, %c0_13] : memref<1x1xf32, #tpu.memory_space<smem>>
      memref.store %21, %arg3[%c0_12, %c0_13] : memref<1x1xf32, #tpu.memory_space<smem>>
    } else {
    }
    return
  }
  func.func @transform_0(%arg0: i32) -> (i32, i32) {
    %c0_i32 = arith.constant 0 : i32
    %c0_i32_0 = arith.constant 0 : i32
    return %arg0, %c0_i32 : i32, i32
  }
  func.func @transform_1(%arg0: i32) -> (i32, i32) {
    %c0_i32 = arith.constant 0 : i32
    %c0_i32_0 = arith.constant 0 : i32
    return %arg0, %c0_i32 : i32, i32
  }
  func.func @transform_2(%arg0: i32) -> (i32, i32) {
    %c0_i32 = arith.constant 0 : i32
    %c0_i32_0 = arith.constant 0 : i32
    %c0_i32_1 = arith.constant 0 : i32
    return %c0_i32, %c0_i32_0 : i32, i32
  }
}

</mosaic_0001>

<bundles_post_ra>
// kernel: tpu_custom_call.1
= control target key start
LH: loop header
LB: loop body
LE: loop exit
PB: predicated region body
PF: predicated region fallthrough
CT: control target
= control target key end

     0   :  { %7 = vsyncpa [#allocation4], 0  ;;  %s347_s0 = inlined_call_operand.hbm [shape: f32[16,128], index: 0, kind: input, shape index: {}]   ;;  %s348_s1 = inlined_call_operand.hbm [shape: f32[16,128], index: 1, kind: input, shape index: {}]   ;;  %s349_s2 = inlined_call_operand.hbm [shape: f32[1,1], index: 2, kind: output, shape index: {}]  }
   0x1   :  { %8 = vsyncpa [#allocation7], 0 }
   0x2   :  { %9 = vsyncpa [#allocation5], 0 }
   0x3   :  { %13 = vsyncadd [#allocation4], 768  ;;  %s14_s11 = sshll.u32 %s347_s0, 4  ;;  %s318_s12 = smov [#allocation3]   ;;  %s15_s11 = int_to_ptr.hbm [resolvable:$true] %s14_s11 }
   0x4   :  { %s16_s13 = sshll.u32 %s318_s12, 4  ;;  %s319_s14 = smov 128   ;;  %s17_s13 = int_to_ptr.vmem [resolvable:$true] %s16_s13 }
   0x5   :  { %s320_s15 = smov 8  }
   0x6   :  { %22 = dma.hbm_to_vmem [thread:$0]  %s15_s11, 256, %s17_s13, [#allocation4], %s319_s14, %s319_s14, %s320_s15  }
   0x7   :  { %26 = vsyncadd [#allocation7], 768  ;;  %s27_s18 = sshll.u32 %s348_s1, 4  ;;  %s321_s19 = smov [#allocation6]   ;;  %s28_s18 = int_to_ptr.hbm [resolvable:$true] %s27_s18 }
   0x8   :  { %s29_s20 = sshll.u32 %s321_s19, 4  ;;  %s30_s20 = int_to_ptr.vmem [resolvable:$true] %s29_s20 }
   0x9   :  { %35 = dma.hbm_to_vmem [thread:$0]  %s28_s18, 256, %s30_s20, [#allocation7], %s319_s14, %s319_s14, %s320_s15  }
   0xa   :  { %312 = dma.done.wait [#allocation4], 1024  }
   0xb   :  { %313 = vsyncadd [#allocation4], 4294966272 }
   0xc   :  { %314 = dma.done.wait [#allocation7], 1024  }
   0xd   :  { %315 = vsyncadd [#allocation7], 4294966272  ;;  %v56_v0 = vld [vmem:[#allocation3] sm:$0xff]  ;;  %v57_v1 = vld [vmem:[#allocation3 + $0x8] sm:$0xff]  ;;  %s233_s21 = sshll.u32 %s349_s2, 4  ;;  %s322_s23 = smov [#allocation8]   ;;  %s234_s21 = int_to_ptr.hbm [resolvable:$true] %s233_s21 }
   0xe   :  { %v64_v2 = vld [vmem:[#allocation6] sm:$0xff]  ;;  %v65_v3 = vld [vmem:[#allocation6 + $0x8] sm:$0xff] }
   0xf   :  { %v72_v4 = vsub.f32 %v56_v0, %v64_v2  ;;  %v73_v5 = vsub.f32 %v57_v1, %v65_v3 }
  0x11   :  { %v80_v6 = vmul.f32 %v72_v4, %v72_v4  ;;  %v81_v7 = vmul.f32 %v73_v5, %v73_v5 }
  0x13   :  { %v88_v8 = vmul.f32 %v80_v6, %v80_v6  ;;  %v89_v9 = vmul.f32 %v81_v7, %v81_v7 }
  0x15   :  { %v210_v10 = vadd.f32 %v89_v9, %v88_v8 }
  0x17   :  { %217 = vadd.xlane.f32.xlu0 %v210_v10 }
  0x8a   :  { %v218_v11 = vpop.xlane.xlu0 %217 }
  0x8b   :  { %v219_v12 = vrot.slane %v218_v11, 4 }
  0x8d   :  { %v220_v13 = vadd.f32 %v219_v12, %v218_v11 }
  0x8f   :  { %v221_v14 = vrot.slane %v220_v13, 2 }
  0x91   :  { %v222_v15 = vadd.f32 %v221_v14, %v220_v13 }
  0x93   :  { %v223_v16 = vrot.slane %v222_v15, 1 }
  0x95   :  { %v224_v17 = vadd.f32 %v223_v16, %v222_v15 }
  0x97   :  { %245 = vpush %v224_v17 }
  0xc8   :  { %s246_s22 = spop %245 }
  0xc9   :  { %227 = sst [smem:[#allocation8]] %s246_s22 }
  0xca   :  { %236 = dma.smem_to_hbm %s322_s23, 16, %s234_s21, [#allocation5]  }
  0xcb   :  { %316 = dma.done.wait [#allocation5], 16  }
  0xcc   :  { %317 = vsyncadd [#allocation5], 4294967280 }
  0xcd   :  { %241 = sfence }
  0xce   :  { %242 = vsyncpa [#allocation4], 1 }
  0xcf   :  { %243 = vsyncpa [#allocation7], 1 }
  0xd0   :  { %244 = vsyncpa [#allocation5], 1 }

</bundles_post_ra>
